<compile_context>
chip_gen: v7x
topology: tpu7x:2x2x1
jax: 0.10.0
libtpu: 0.0.40
codegen_flags: <defaults>
</compile_context>

<pallas_src>
import jax
import jax.numpy as jnp
from jax import lax
from jax.experimental import pallas as pl
from jax.experimental.pallas import tpu as pltpu

N_EMBED = 32
N_HEAD = 4
HEAD_DIM = N_EMBED // N_HEAD
N_HIDDEN = 4 * N_EMBED
LN_EPS = 1e-5


# ----------------------------- kernel helpers -------------------------------

def _layernorm(x, g, b):
    mean = jnp.mean(x, axis=-1, keepdims=True)
    var = jnp.mean((x - mean) ** 2, axis=-1, keepdims=True)
    return (x - mean) * lax.rsqrt(var + LN_EPS) * g + b


def _split_heads(t2d, n_head):
    """(S, E) -> (H, S, d), reproducing torch's `.view(B, n_head, S, d)` applied
    directly to a row-major (B, S, E) buffer, for a single batch.

    Uses only static (1, d) slices + concatenation + a leading-axis stack so it
    lowers cleanly in Mosaic (no minor-dim reshapes inside the kernel)."""
    S, E = t2d.shape
    d = E // n_head
    heads = []
    for h in range(n_head):
        rows = []
        for s in range(S):
            flat = h * S * d + s * d            # flat offset within this batch
            r, c = flat // E, flat % E          # source row / col in (S, E)
            rows.append(t2d[r:r + 1, c:c + d])  # (1, d) static slice
        heads.append(jnp.concatenate(rows, axis=0))   # (S, d)
    return jnp.stack(heads, axis=0)                   # (H, S, d)


# --------------------------------- kernel ------------------------------------

def block_kernel(x_ref, ln1_g_ref, ln1_b_ref, w_qkv_ref, wp_ref,
                 ln2_g_ref, ln2_b_ref, w1_ref, b1_ref, w2_ref, b2_ref,
                 o_ref):
    S, E = x_ref.shape
    H = N_HEAD

    x = x_ref[...]                                              # (S, E)

    # ---- ln_1 (f32 VPU math) ----
    ln1 = _layernorm(x, ln1_g_ref[...], ln1_b_ref[...])

    # ---- fused q/k/v projection: single MXU matmul on (E, 3E) weight ----
    qkv = jnp.dot(ln1, w_qkv_ref[...], preferred_element_type=jnp.float32)  # (S, 3E)
    q2 = qkv[:, 0:E]
    k2 = qkv[:, E:2 * E]
    v2 = qkv[:, 2 * E:3 * E]

    # ---- the module's `.view(B, n_head, S, d)` straight from (B, S, E) ----
    q3 = _split_heads(q2, H)                                    # (H, S, d)
    k3 = _split_heads(k2, H)
    v3 = _split_heads(v2, H)

    # ---- attention (softmax scale already folded into Wq on the host) ----
    s = jnp.einsum("hqd,hkd->hqk", q3, k3, preferred_element_type=jnp.float32)
    # TODO(synk): optional attention mask (masked_fill(mask==0, -128)) not wired.
    m = jnp.max(s, axis=-1, keepdims=True)
    p = jnp.exp(s - m)
    p = p * pl.reciprocal(jnp.sum(p, axis=-1, keepdims=True), approx=True)
    # attention dropout: eval mode -> identity
    o3 = jnp.einsum("hqk,hkd->hqd", p, v3, preferred_element_type=jnp.float32)  # (H,S,d)

    # ---- permute(0,2,1,3).view(B, S, E): lane-concat of per-head outputs ----
    attn2d = jnp.concatenate([o3[h] for h in range(H)], axis=1)  # (S, E)

    # ---- output projection + residual ----
    x_attn = x + jnp.dot(attn2d, wp_ref[...], preferred_element_type=jnp.float32)

    # ---- ln_2 + FFN + residual (ffn dropout: eval mode -> identity) ----
    ln2 = _layernorm(x_attn, ln2_g_ref[...], ln2_b_ref[...])
    hmid = jnp.maximum(
        jnp.dot(ln2, w1_ref[...], preferred_element_type=jnp.float32) + b1_ref[...],
        0.0)
    ffn = jnp.dot(hmid, w2_ref[...], preferred_element_type=jnp.float32) + b2_ref[...]
    o_ref[...] = x_attn + ffn


# --------------------------- pallas_call wrapper -----------------------------

@jax.jit
def block_forward(x, p):
    B, S, E = x.shape
    x2 = x.reshape(B * S, E)                    # free (row-major) reshape

    # Host-side weight prep (folded into the jit, negligible):
    #  * concat Wq|Wk|Wv -> one (E, 3E) matmul operand
    #  * fold the 1/sqrt(head_dim) softmax scale into Wq
    w_qkv = jnp.concatenate(
        [p["wq_t"] * (float(HEAD_DIM) ** -0.5), p["wk_t"], p["wv_t"]], axis=1)

    def full(a):
        return pl.BlockSpec(a.shape, lambda b, n=a.ndim: (0,) * n)

    out = pl.pallas_call(
        block_kernel,
        grid=(B,),
        in_specs=[
            pl.BlockSpec((S, E), lambda b: (b, 0)),   # this batch's rows of x
            full(p["ln1_g"]), full(p["ln1_b"]),
            full(w_qkv), full(p["wp_t"]),
            full(p["ln2_g"]), full(p["ln2_b"]),
            full(p["w1_t"]), full(p["b1"]),
            full(p["w2_t"]), full(p["b2"]),
        ],
        out_specs=pl.BlockSpec((S, E), lambda b: (b, 0)),
        out_shape=jax.ShapeDtypeStruct((B * S, E), jnp.float32),
        compiler_params=pltpu.CompilerParams(
            dimension_semantics=("parallel",)),       # v7x: shard batches over TCs
    )(x2, p["ln1_g"], p["ln1_b"], w_qkv, p["wp_t"],
      p["ln2_g"], p["ln2_b"], p["w1_t"], p["b1"], p["w2_t"], p["b2"])
    return out.reshape(B, S, E)


# ------------------------------ reference -----------------------------------

def block_ref(x, p):
    def ln(v, g, b):
        mean = jnp.mean(v, -1, keepdims=True)
        var = jnp.mean((v - mean) ** 2, -1, keepdims=True)
        return (v - mean) / jnp.sqrt(var + LN_EPS) * g + b

    B, S, E = x.shape
    H, d = N_HEAD, HEAD_DIM
    x2 = x.reshape(B * S, E)
    ln1 = ln(x2, p["ln1_g"], p["ln1_b"])
    q = (ln1 @ p["wq_t"]).reshape(B, H, S, d)
    k = (ln1 @ p["wk_t"]).reshape(B, H, S, d)
    v = (ln1 @ p["wv_t"]).reshape(B, H, S, d)
    w = jnp.einsum("bhqd,bhkd->bhqk", q, k) / float(d) ** 0.5
    w = jax.nn.softmax(w, axis=-1)
    o = jnp.einsum("bhqk,bhkd->bhqd", w, v)
    o = o.transpose(0, 2, 1, 3).reshape(B * S, E)
    x_attn = x2 + o @ p["wp_t"]
    ln2 = ln(x_attn, p["ln2_g"], p["ln2_b"])
    h = jnp.maximum(ln2 @ p["w1_t"] + p["b1"], 0.0)
    out = x_attn + h @ p["w2_t"] + p["b2"]
    return out.reshape(B, S, E)


# ------------------------------- main ---------------------------------------

if __name__ == "__main__":
    key = jax.random.PRNGKey(0)
    keys = jax.random.split(key, 13)
    E, Hd = N_EMBED, N_HIDDEN

    def nrm(k, shape, std=0.02):
        return (std * jax.random.normal(k, shape)).astype(jnp.float32)

    params = {
        # LayerNorm params (stored as (1, E) for in-kernel broadcast)
        "ln1_g": (1.0 + nrm(keys[0], (1, E), 0.1)),
        "ln1_b": nrm(keys[1], (1, E), 0.1),
        "ln2_g": (1.0 + nrm(keys[2], (1, E), 0.1)),
        "ln2_b": nrm(keys[3], (1, E), 0.1),
        # attention linear weights, stored already transposed (in, out) so y = x @ W^T
        "wq_t": nrm(keys[4], (E, E)),
        "wk_t": nrm(keys[5], (E, E)),
        "wv_t": nrm(keys[6], (E, E)),
        "wp_t": nrm(keys[7], (E, E)),
        # FFN: fc1 (E -> 4E), fc2 (4E -> E), with biases
        "w1_t": nrm(keys[8], (E, Hd)),
        "b1": nrm(keys[9], (1, Hd), 0.1),
        "w2_t": nrm(keys[10], (Hd, E)),
        "b2": nrm(keys[11], (1, E), 0.1),
    }

    # small input: batch=2, seq=8, n_embed=32
    x = jax.random.normal(keys[12], (2, 8, N_EMBED), dtype=jnp.float32)

    out = block_forward(x, params)
    out = jax.block_until_ready(out)

    ref = block_ref(x, params)
    assert out.shape == ref.shape == x.shape
    assert bool(jnp.allclose(out, ref, rtol=1e-2, atol=1e-2)), (
        "mismatch vs reference: max abs diff %e" % float(jnp.max(jnp.abs(out - ref)))
    )

    print("KERNEL_OK")
</pallas_src>

<mosaic_0001>
module attributes {stable_mosaic.version = 11 : i64} {
  func.func @block_kernel(%arg0: i32, %arg1: memref<8x32xf32, #tpu.memory_space<vmem>>, %arg2: memref<1x32xf32, #tpu.memory_space<vmem>>, %arg3: memref<1x32xf32, #tpu.memory_space<vmem>>, %arg4: memref<32x96xf32, #tpu.memory_space<vmem>>, %arg5: memref<32x32xf32, #tpu.memory_space<vmem>>, %arg6: memref<1x32xf32, #tpu.memory_space<vmem>>, %arg7: memref<1x32xf32, #tpu.memory_space<vmem>>, %arg8: memref<32x128xf32, #tpu.memory_space<vmem>>, %arg9: memref<1x128xf32, #tpu.memory_space<vmem>>, %arg10: memref<128x32xf32, #tpu.memory_space<vmem>>, %arg11: memref<1x32xf32, #tpu.memory_space<vmem>>, %arg12: memref<8x32xf32, #tpu.memory_space<vmem>>) attributes {dimension_semantics = [#tpu.dimension_semantics<parallel>], iteration_bounds = array<i64: 2>, scalar_prefetch = 0 : i64, scratch_operands = 0 : i64, tpu.core_type = #tpu.core_type<tc>, window_params = [{transform_indices = @transform_0, window_bounds = array<i64: 8, 32>}, {pipeline_mode = #tpu.pipeline_mode<synchronous>, transform_indices = @transform_1, window_bounds = array<i64: 1, 32>}, {pipeline_mode = #tpu.pipeline_mode<synchronous>, transform_indices = @transform_2, window_bounds = array<i64: 1, 32>}, {pipeline_mode = #tpu.pipeline_mode<synchronous>, transform_indices = @transform_3, window_bounds = array<i64: 32, 96>}, {pipeline_mode = #tpu.pipeline_mode<synchronous>, transform_indices = @transform_4, window_bounds = array<i64: 32, 32>}, {pipeline_mode = #tpu.pipeline_mode<synchronous>, transform_indices = @transform_5, window_bounds = array<i64: 1, 32>}, {pipeline_mode = #tpu.pipeline_mode<synchronous>, transform_indices = @transform_6, window_bounds = array<i64: 1, 32>}, {pipeline_mode = #tpu.pipeline_mode<synchronous>, transform_indices = @transform_7, window_bounds = array<i64: 32, 128>}, {pipeline_mode = #tpu.pipeline_mode<synchronous>, transform_indices = @transform_8, window_bounds = array<i64: 1, 128>}, {pipeline_mode = #tpu.pipeline_mode<synchronous>, transform_indices = @transform_9, window_bounds = array<i64: 128, 32>}, {pipeline_mode = #tpu.pipeline_mode<synchronous>, transform_indices = @transform_10, window_bounds = array<i64: 1, 32>}, {transform_indices = @transform_11, window_bounds = array<i64: 8, 32>}]} {
    %c0 = arith.constant 0 : index
    %c0_0 = arith.constant 0 : index
    %0 = vector.load %arg1[%c0, %c0_0] : memref<8x32xf32, #tpu.memory_space<vmem>>, vector<8x32xf32>
    %c0_1 = arith.constant 0 : index
    %c0_2 = arith.constant 0 : index
    %1 = vector.load %arg2[%c0_1, %c0_2] : memref<1x32xf32, #tpu.memory_space<vmem>>, vector<1x32xf32>
    %c0_3 = arith.constant 0 : index
    %c0_4 = arith.constant 0 : index
    %2 = vector.load %arg3[%c0_3, %c0_4] : memref<1x32xf32, #tpu.memory_space<vmem>>, vector<1x32xf32>
    %cst = arith.constant dense<0.000000e+00> : vector<8xf32>
    %3 = vector.multi_reduction <add>, %0, %cst [1] : vector<8x32xf32> to vector<8xf32>
    %4 = vector.shape_cast %3 : vector<8xf32> to vector<8x1xf32>
    %cst_5 = arith.constant 3.200000e+01 : f32
    %5 = vector.broadcast %cst_5 : f32 to vector<8x1xf32>
    %6 = arith.divf %4, %5 : vector<8x1xf32>
    %7 = vector.broadcast %6 : vector<8x1xf32> to vector<8x32xf32>
    %8 = arith.subf %0, %7 : vector<8x32xf32>
    %9 = arith.mulf %8, %8 : vector<8x32xf32>
    %cst_6 = arith.constant dense<0.000000e+00> : vector<8xf32>
    %10 = vector.multi_reduction <add>, %9, %cst_6 [1] : vector<8x32xf32> to vector<8xf32>
    %11 = vector.shape_cast %10 : vector<8xf32> to vector<8x1xf32>
    %cst_7 = arith.constant 3.200000e+01 : f32
    %12 = vector.broadcast %cst_7 : f32 to vector<8x1xf32>
    %13 = arith.divf %11, %12 : vector<8x1xf32>
    %14 = vector.broadcast %6 : vector<8x1xf32> to vector<8x32xf32>
    %15 = arith.subf %0, %14 : vector<8x32xf32>
    %cst_8 = arith.constant 9.99999974E-6 : f32
    %16 = vector.broadcast %cst_8 : f32 to vector<8x1xf32>
    %17 = arith.addf %13, %16 : vector<8x1xf32>
    %18 = math.rsqrt %17 : vector<8x1xf32>
    %19 = vector.broadcast %18 : vector<8x1xf32> to vector<8x32xf32>
    %20 = arith.mulf %15, %19 : vector<8x32xf32>
    %21 = vector.broadcast %1 : vector<1x32xf32> to vector<8x32xf32>
    %22 = arith.mulf %20, %21 : vector<8x32xf32>
    %23 = vector.broadcast %2 : vector<1x32xf32> to vector<8x32xf32>
    %24 = arith.addf %22, %23 : vector<8x32xf32>
    %c0_9 = arith.constant 0 : index
    %c0_10 = arith.constant 0 : index
    %25 = vector.load %arg4[%c0_9, %c0_10] : memref<32x96xf32, #tpu.memory_space<vmem>>, vector<32x96xf32>
    %cst_11 = arith.constant dense<0.000000e+00> : vector<8x96xf32>
    %26 = tpu.matmul %24, %25, %cst_11 {dimension_numbers = #tpu.dot_dimension_numbers<[1], [0], [0], [1], [0, 0, 1, 1], [], []>} : vector<8x32xf32>, vector<32x96xf32>, vector<8x96xf32> -> vector<8x96xf32>
    %27 = vector.extract_strided_slice %26 {offsets = [0, 0], sizes = [8, 32], strides = [1, 1]} : vector<8x96xf32> to vector<8x32xf32>
    %28 = vector.extract_strided_slice %26 {offsets = [0, 32], sizes = [8, 32], strides = [1, 1]} : vector<8x96xf32> to vector<8x32xf32>
    %29 = vector.extract_strided_slice %26 {offsets = [0, 64], sizes = [8, 32], strides = [1, 1]} : vector<8x96xf32> to vector<8x32xf32>
    %30 = vector.extract_strided_slice %27 {offsets = [0, 0], sizes = [1, 8], strides = [1, 1]} : vector<8x32xf32> to vector<1x8xf32>
    %31 = vector.extract_strided_slice %27 {offsets = [0, 8], sizes = [1, 8], strides = [1, 1]} : vector<8x32xf32> to vector<1x8xf32>
    %32 = vector.extract_strided_slice %27 {offsets = [0, 16], sizes = [1, 8], strides = [1, 1]} : vector<8x32xf32> to vector<1x8xf32>
    %33 = vector.extract_strided_slice %27 {offsets = [0, 24], sizes = [1, 8], strides = [1, 1]} : vector<8x32xf32> to vector<1x8xf32>
    %34 = vector.extract_strided_slice %27 {offsets = [1, 0], sizes = [1, 8], strides = [1, 1]} : vector<8x32xf32> to vector<1x8xf32>
    %35 = vector.extract_strided_slice %27 {offsets = [1, 8], sizes = [1, 8], strides = [1, 1]} : vector<8x32xf32> to vector<1x8xf32>
    %36 = vector.extract_strided_slice %27 {offsets = [1, 16], sizes = [1, 8], strides = [1, 1]} : vector<8x32xf32> to vector<1x8xf32>
    %37 = vector.extract_strided_slice %27 {offsets = [1, 24], sizes = [1, 8], strides = [1, 1]} : vector<8x32xf32> to vector<1x8xf32>
    %38 = tpu.concatenate %30, %31, %32, %33, %34, %35, %36, %37 in 0 : vector<1x8xf32>, vector<1x8xf32>, vector<1x8xf32>, vector<1x8xf32>, vector<1x8xf32>, vector<1x8xf32>, vector<1x8xf32>, vector<1x8xf32> -> vector<8x8xf32>
    %39 = vector.extract_strided_slice %27 {offsets = [2, 0], sizes = [1, 8], strides = [1, 1]} : vector<8x32xf32> to vector<1x8xf32>
    %40 = vector.extract_strided_slice %27 {offsets = [2, 8], sizes = [1, 8], strides = [1, 1]} : vector<8x32xf32> to vector<1x8xf32>
    %41 = vector.extract_strided_slice %27 {offsets = [2, 16], sizes = [1, 8], strides = [1, 1]} : vector<8x32xf32> to vector<1x8xf32>
    %42 = vector.extract_strided_slice %27 {offsets = [2, 24], sizes = [1, 8], strides = [1, 1]} : vector<8x32xf32> to vector<1x8xf32>
    %43 = vector.extract_strided_slice %27 {offsets = [3, 0], sizes = [1, 8], strides = [1, 1]} : vector<8x32xf32> to vector<1x8xf32>
    %44 = vector.extract_strided_slice %27 {offsets = [3, 8], sizes = [1, 8], strides = [1, 1]} : vector<8x32xf32> to vector<1x8xf32>
    %45 = vector.extract_strided_slice %27 {offsets = [3, 16], sizes = [1, 8], strides = [1, 1]} : vector<8x32xf32> to vector<1x8xf32>
    %46 = vector.extract_strided_slice %27 {offsets = [3, 24], sizes = [1, 8], strides = [1, 1]} : vector<8x32xf32> to vector<1x8xf32>
    %47 = tpu.concatenate %39, %40, %41, %42, %43, %44, %45, %46 in 0 : vector<1x8xf32>, vector<1x8xf32>, vector<1x8xf32>, vector<1x8xf32>, vector<1x8xf32>, vector<1x8xf32>, vector<1x8xf32>, vector<1x8xf32> -> vector<8x8xf32>
    %48 = vector.extract_strided_slice %27 {offsets = [4, 0], sizes = [1, 8], strides = [1, 1]} : vector<8x32xf32> to vector<1x8xf32>
    %49 = vector.extract_strided_slice %27 {offsets = [4, 8], sizes = [1, 8], strides = [1, 1]} : vector<8x32xf32> to vector<1x8xf32>
    %50 = vector.extract_strided_slice %27 {offsets = [4, 16], sizes = [1, 8], strides = [1, 1]} : vector<8x32xf32> to vector<1x8xf32>
    %51 = vector.extract_strided_slice %27 {offsets = [4, 24], sizes = [1, 8], strides = [1, 1]} : vector<8x32xf32> to vector<1x8xf32>
    %52 = vector.extract_strided_slice %27 {offsets = [5, 0], sizes = [1, 8], strides = [1, 1]} : vector<8x32xf32> to vector<1x8xf32>
    %53 = vector.extract_strided_slice %27 {offsets = [5, 8], sizes = [1, 8], strides = [1, 1]} : vector<8x32xf32> to vector<1x8xf32>
    %54 = vector.extract_strided_slice %27 {offsets = [5, 16], sizes = [1, 8], strides = [1, 1]} : vector<8x32xf32> to vector<1x8xf32>
    %55 = vector.extract_strided_slice %27 {offsets = [5, 24], sizes = [1, 8], strides = [1, 1]} : vector<8x32xf32> to vector<1x8xf32>
    %56 = tpu.concatenate %48, %49, %50, %51, %52, %53, %54, %55 in 0 : vector<1x8xf32>, vector<1x8xf32>, vector<1x8xf32>, vector<1x8xf32>, vector<1x8xf32>, vector<1x8xf32>, vector<1x8xf32>, vector<1x8xf32> -> vector<8x8xf32>
    %57 = vector.extract_strided_slice %27 {offsets = [6, 0], sizes = [1, 8], strides = [1, 1]} : vector<8x32xf32> to vector<1x8xf32>
    %58 = vector.extract_strided_slice %27 {offsets = [6, 8], sizes = [1, 8], strides = [1, 1]} : vector<8x32xf32> to vector<1x8xf32>
    %59 = vector.extract_strided_slice %27 {offsets = [6, 16], sizes = [1, 8], strides = [1, 1]} : vector<8x32xf32> to vector<1x8xf32>
    %60 = vector.extract_strided_slice %27 {offsets = [6, 24], sizes = [1, 8], strides = [1, 1]} : vector<8x32xf32> to vector<1x8xf32>
    %61 = vector.extract_strided_slice %27 {offsets = [7, 0], sizes = [1, 8], strides = [1, 1]} : vector<8x32xf32> to vector<1x8xf32>
    %62 = vector.extract_strided_slice %27 {offsets = [7, 8], sizes = [1, 8], strides = [1, 1]} : vector<8x32xf32> to vector<1x8xf32>
    %63 = vector.extract_strided_slice %27 {offsets = [7, 16], sizes = [1, 8], strides = [1, 1]} : vector<8x32xf32> to vector<1x8xf32>
    %64 = vector.extract_strided_slice %27 {offsets = [7, 24], sizes = [1, 8], strides = [1, 1]} : vector<8x32xf32> to vector<1x8xf32>
    %65 = tpu.concatenate %57, %58, %59, %60, %61, %62, %63, %64 in 0 : vector<1x8xf32>, vector<1x8xf32>, vector<1x8xf32>, vector<1x8xf32>, vector<1x8xf32>, vector<1x8xf32>, vector<1x8xf32>, vector<1x8xf32> -> vector<8x8xf32>
    %66 = vector.shape_cast %38 : vector<8x8xf32> to vector<1x8x8xf32>
    %67 = vector.shape_cast %47 : vector<8x8xf32> to vector<1x8x8xf32>
    %68 = vector.shape_cast %56 : vector<8x8xf32> to vector<1x8x8xf32>
    %69 = vector.shape_cast %65 : vector<8x8xf32> to vector<1x8x8xf32>
    %70 = tpu.concatenate %66, %67, %68, %69 in 0 : vector<1x8x8xf32>, vector<1x8x8xf32>, vector<1x8x8xf32>, vector<1x8x8xf32> -> vector<4x8x8xf32>
    %71 = vector.extract_strided_slice %28 {offsets = [0, 0], sizes = [1, 8], strides = [1, 1]} : vector<8x32xf32> to vector<1x8xf32>
    %72 = vector.extract_strided_slice %28 {offsets = [0, 8], sizes = [1, 8], strides = [1, 1]} : vector<8x32xf32> to vector<1x8xf32>
    %73 = vector.extract_strided_slice %28 {offsets = [0, 16], sizes = [1, 8], strides = [1, 1]} : vector<8x32xf32> to vector<1x8xf32>
    %74 = vector.extract_strided_slice %28 {offsets = [0, 24], sizes = [1, 8], strides = [1, 1]} : vector<8x32xf32> to vector<1x8xf32>
    %75 = vector.extract_strided_slice %28 {offsets = [1, 0], sizes = [1, 8], strides = [1, 1]} : vector<8x32xf32> to vector<1x8xf32>
    %76 = vector.extract_strided_slice %28 {offsets = [1, 8], sizes = [1, 8], strides = [1, 1]} : vector<8x32xf32> to vector<1x8xf32>
    %77 = vector.extract_strided_slice %28 {offsets = [1, 16], sizes = [1, 8], strides = [1, 1]} : vector<8x32xf32> to vector<1x8xf32>
    %78 = vector.extract_strided_slice %28 {offsets = [1, 24], sizes = [1, 8], strides = [1, 1]} : vector<8x32xf32> to vector<1x8xf32>
    %79 = tpu.concatenate %71, %72, %73, %74, %75, %76, %77, %78 in 0 : vector<1x8xf32>, vector<1x8xf32>, vector<1x8xf32>, vector<1x8xf32>, vector<1x8xf32>, vector<1x8xf32>, vector<1x8xf32>, vector<1x8xf32> -> vector<8x8xf32>
    %80 = vector.extract_strided_slice %28 {offsets = [2, 0], sizes = [1, 8], strides = [1, 1]} : vector<8x32xf32> to vector<1x8xf32>
    %81 = vector.extract_strided_slice %28 {offsets = [2, 8], sizes = [1, 8], strides = [1, 1]} : vector<8x32xf32> to vector<1x8xf32>
    %82 = vector.extract_strided_slice %28 {offsets = [2, 16], sizes = [1, 8], strides = [1, 1]} : vector<8x32xf32> to vector<1x8xf32>
    %83 = vector.extract_strided_slice %28 {offsets = [2, 24], sizes = [1, 8], strides = [1, 1]} : vector<8x32xf32> to vector<1x8xf32>
    %84 = vector.extract_strided_slice %28 {offsets = [3, 0], sizes = [1, 8], strides = [1, 1]} : vector<8x32xf32> to vector<1x8xf32>
    %85 = vector.extract_strided_slice %28 {offsets = [3, 8], sizes = [1, 8], strides = [1, 1]} : vector<8x32xf32> to vector<1x8xf32>
    %86 = vector.extract_strided_slice %28 {offsets = [3, 16], sizes = [1, 8], strides = [1, 1]} : vector<8x32xf32> to vector<1x8xf32>
    %87 = vector.extract_strided_slice %28 {offsets = [3, 24], sizes = [1, 8], strides = [1, 1]} : vector<8x32xf32> to vector<1x8xf32>
    %88 = tpu.concatenate %80, %81, %82, %83, %84, %85, %86, %87 in 0 : vector<1x8xf32>, vector<1x8xf32>, vector<1x8xf32>, vector<1x8xf32>, vector<1x8xf32>, vector<1x8xf32>, vector<1x8xf32>, vector<1x8xf32> -> vector<8x8xf32>
    %89 = vector.extract_strided_slice %28 {offsets = [4, 0], sizes = [1, 8], strides = [1, 1]} : vector<8x32xf32> to vector<1x8xf32>
    %90 = vector.extract_strided_slice %28 {offsets = [4, 8], sizes = [1, 8], strides = [1, 1]} : vector<8x32xf32> to vector<1x8xf32>
    %91 = vector.extract_strided_slice %28 {offsets = [4, 16], sizes = [1, 8], strides = [1, 1]} : vector<8x32xf32> to vector<1x8xf32>
    %92 = vector.extract_strided_slice %28 {offsets = [4, 24], sizes = [1, 8], strides = [1, 1]} : vector<8x32xf32> to vector<1x8xf32>
    %93 = vector.extract_strided_slice %28 {offsets = [5, 0], sizes = [1, 8], strides = [1, 1]} : vector<8x32xf32> to vector<1x8xf32>
    %94 = vector.extract_strided_slice %28 {offsets = [5, 8], sizes = [1, 8], strides = [1, 1]} : vector<8x32xf32> to vector<1x8xf32>
    %95 = vector.extract_strided_slice %28 {offsets = [5, 16], sizes = [1, 8], strides = [1, 1]} : vector<8x32xf32> to vector<1x8xf32>
    %96 = vector.extract_strided_slice %28 {offsets = [5, 24], sizes = [1, 8], strides = [1, 1]} : vector<8x32xf32> to vector<1x8xf32>
    %97 = tpu.concatenate %89, %90, %91, %92, %93, %94, %95, %96 in 0 : vector<1x8xf32>, vector<1x8xf32>, vector<1x8xf32>, vector<1x8xf32>, vector<1x8xf32>, vector<1x8xf32>, vector<1x8xf32>, vector<1x8xf32> -> vector<8x8xf32>
    %98 = vector.extract_strided_slice %28 {offsets = [6, 0], sizes = [1, 8], strides = [1, 1]} : vector<8x32xf32> to vector<1x8xf32>
    %99 = vector.extract_strided_slice %28 {offsets = [6, 8], sizes = [1, 8], strides = [1, 1]} : vector<8x32xf32> to vector<1x8xf32>
    %100 = vector.extract_strided_slice %28 {offsets = [6, 16], sizes = [1, 8], strides = [1, 1]} : vector<8x32xf32> to vector<1x8xf32>
    %101 = vector.extract_strided_slice %28 {offsets = [6, 24], sizes = [1, 8], strides = [1, 1]} : vector<8x32xf32> to vector<1x8xf32>
    %102 = vector.extract_strided_slice %28 {offsets = [7, 0], sizes = [1, 8], strides = [1, 1]} : vector<8x32xf32> to vector<1x8xf32>
    %103 = vector.extract_strided_slice %28 {offsets = [7, 8], sizes = [1, 8], strides = [1, 1]} : vector<8x32xf32> to vector<1x8xf32>
    %104 = vector.extract_strided_slice %28 {offsets = [7, 16], sizes = [1, 8], strides = [1, 1]} : vector<8x32xf32> to vector<1x8xf32>
    %105 = vector.extract_strided_slice %28 {offsets = [7, 24], sizes = [1, 8], strides = [1, 1]} : vector<8x32xf32> to vector<1x8xf32>
    %106 = tpu.concatenate %98, %99, %100, %101, %102, %103, %104, %105 in 0 : vector<1x8xf32>, vector<1x8xf32>, vector<1x8xf32>, vector<1x8xf32>, vector<1x8xf32>, vector<1x8xf32>, vector<1x8xf32>, vector<1x8xf32> -> vector<8x8xf32>
    %107 = vector.shape_cast %79 : vector<8x8xf32> to vector<1x8x8xf32>
    %108 = vector.shape_cast %88 : vector<8x8xf32> to vector<1x8x8xf32>
    %109 = vector.shape_cast %97 : vector<8x8xf32> to vector<1x8x8xf32>
    %110 = vector.shape_cast %106 : vector<8x8xf32> to vector<1x8x8xf32>
    %111 = tpu.concatenate %107, %108, %109, %110 in 0 : vector<1x8x8xf32>, vector<1x8x8xf32>, vector<1x8x8xf32>, vector<1x8x8xf32> -> vector<4x8x8xf32>
    %112 = vector.extract_strided_slice %29 {offsets = [0, 0], sizes = [1, 8], strides = [1, 1]} : vector<8x32xf32> to vector<1x8xf32>
    %113 = vector.extract_strided_slice %29 {offsets = [0, 8], sizes = [1, 8], strides = [1, 1]} : vector<8x32xf32> to vector<1x8xf32>
    %114 = vector.extract_strided_slice %29 {offsets = [0, 16], sizes = [1, 8], strides = [1, 1]} : vector<8x32xf32> to vector<1x8xf32>
    %115 = vector.extract_strided_slice %29 {offsets = [0, 24], sizes = [1, 8], strides = [1, 1]} : vector<8x32xf32> to vector<1x8xf32>
    %116 = vector.extract_strided_slice %29 {offsets = [1, 0], sizes = [1, 8], strides = [1, 1]} : vector<8x32xf32> to vector<1x8xf32>
    %117 = vector.extract_strided_slice %29 {offsets = [1, 8], sizes = [1, 8], strides = [1, 1]} : vector<8x32xf32> to vector<1x8xf32>
    %118 = vector.extract_strided_slice %29 {offsets = [1, 16], sizes = [1, 8], strides = [1, 1]} : vector<8x32xf32> to vector<1x8xf32>
    %119 = vector.extract_strided_slice %29 {offsets = [1, 24], sizes = [1, 8], strides = [1, 1]} : vector<8x32xf32> to vector<1x8xf32>
    %120 = tpu.concatenate %112, %113, %114, %115, %116, %117, %118, %119 in 0 : vector<1x8xf32>, vector<1x8xf32>, vector<1x8xf32>, vector<1x8xf32>, vector<1x8xf32>, vector<1x8xf32>, vector<1x8xf32>, vector<1x8xf32> -> vector<8x8xf32>
    %121 = vector.extract_strided_slice %29 {offsets = [2, 0], sizes = [1, 8], strides = [1, 1]} : vector<8x32xf32> to vector<1x8xf32>
    %122 = vector.extract_strided_slice %29 {offsets = [2, 8], sizes = [1, 8], strides = [1, 1]} : vector<8x32xf32> to vector<1x8xf32>
    %123 = vector.extract_strided_slice %29 {offsets = [2, 16], sizes = [1, 8], strides = [1, 1]} : vector<8x32xf32> to vector<1x8xf32>
    %124 = vector.extract_strided_slice %29 {offsets = [2, 24], sizes = [1, 8], strides = [1, 1]} : vector<8x32xf32> to vector<1x8xf32>
    %125 = vector.extract_strided_slice %29 {offsets = [3, 0], sizes = [1, 8], strides = [1, 1]} : vector<8x32xf32> to vector<1x8xf32>
    %126 = vector.extract_strided_slice %29 {offsets = [3, 8], sizes = [1, 8], strides = [1, 1]} : vector<8x32xf32> to vector<1x8xf32>
    %127 = vector.extract_strided_slice %29 {offsets = [3, 16], sizes = [1, 8], strides = [1, 1]} : vector<8x32xf32> to vector<1x8xf32>
    %128 = vector.extract_strided_slice %29 {offsets = [3, 24], sizes = [1, 8], strides = [1, 1]} : vector<8x32xf32> to vector<1x8xf32>
    %129 = tpu.concatenate %121, %122, %123, %124, %125, %126, %127, %128 in 0 : vector<1x8xf32>, vector<1x8xf32>, vector<1x8xf32>, vector<1x8xf32>, vector<1x8xf32>, vector<1x8xf32>, vector<1x8xf32>, vector<1x8xf32> -> vector<8x8xf32>
    %130 = vector.extract_strided_slice %29 {offsets = [4, 0], sizes = [1, 8], strides = [1, 1]} : vector<8x32xf32> to vector<1x8xf32>
    %131 = vector.extract_strided_slice %29 {offsets = [4, 8], sizes = [1, 8], strides = [1, 1]} : vector<8x32xf32> to vector<1x8xf32>
    %132 = vector.extract_strided_slice %29 {offsets = [4, 16], sizes = [1, 8], strides = [1, 1]} : vector<8x32xf32> to vector<1x8xf32>
    %133 = vector.extract_strided_slice %29 {offsets = [4, 24], sizes = [1, 8], strides = [1, 1]} : vector<8x32xf32> to vector<1x8xf32>
    %134 = vector.extract_strided_slice %29 {offsets = [5, 0], sizes = [1, 8], strides = [1, 1]} : vector<8x32xf32> to vector<1x8xf32>
    %135 = vector.extract_strided_slice %29 {offsets = [5, 8], sizes = [1, 8], strides = [1, 1]} : vector<8x32xf32> to vector<1x8xf32>
    %136 = vector.extract_strided_slice %29 {offsets = [5, 16], sizes = [1, 8], strides = [1, 1]} : vector<8x32xf32> to vector<1x8xf32>
    %137 = vector.extract_strided_slice %29 {offsets = [5, 24], sizes = [1, 8], strides = [1, 1]} : vector<8x32xf32> to vector<1x8xf32>
    %138 = tpu.concatenate %130, %131, %132, %133, %134, %135, %136, %137 in 0 : vector<1x8xf32>, vector<1x8xf32>, vector<1x8xf32>, vector<1x8xf32>, vector<1x8xf32>, vector<1x8xf32>, vector<1x8xf32>, vector<1x8xf32> -> vector<8x8xf32>
    %139 = vector.extract_strided_slice %29 {offsets = [6, 0], sizes = [1, 8], strides = [1, 1]} : vector<8x32xf32> to vector<1x8xf32>
    %140 = vector.extract_strided_slice %29 {offsets = [6, 8], sizes = [1, 8], strides = [1, 1]} : vector<8x32xf32> to vector<1x8xf32>
    %141 = vector.extract_strided_slice %29 {offsets = [6, 16], sizes = [1, 8], strides = [1, 1]} : vector<8x32xf32> to vector<1x8xf32>
    %142 = vector.extract_strided_slice %29 {offsets = [6, 24], sizes = [1, 8], strides = [1, 1]} : vector<8x32xf32> to vector<1x8xf32>
    %143 = vector.extract_strided_slice %29 {offsets = [7, 0], sizes = [1, 8], strides = [1, 1]} : vector<8x32xf32> to vector<1x8xf32>
    %144 = vector.extract_strided_slice %29 {offsets = [7, 8], sizes = [1, 8], strides = [1, 1]} : vector<8x32xf32> to vector<1x8xf32>
    %145 = vector.extract_strided_slice %29 {offsets = [7, 16], sizes = [1, 8], strides = [1, 1]} : vector<8x32xf32> to vector<1x8xf32>
    %146 = vector.extract_strided_slice %29 {offsets = [7, 24], sizes = [1, 8], strides = [1, 1]} : vector<8x32xf32> to vector<1x8xf32>
    %147 = tpu.concatenate %139, %140, %141, %142, %143, %144, %145, %146 in 0 : vector<1x8xf32>, vector<1x8xf32>, vector<1x8xf32>, vector<1x8xf32>, vector<1x8xf32>, vector<1x8xf32>, vector<1x8xf32>, vector<1x8xf32> -> vector<8x8xf32>
    %148 = vector.shape_cast %120 : vector<8x8xf32> to vector<1x8x8xf32>
    %149 = vector.shape_cast %129 : vector<8x8xf32> to vector<1x8x8xf32>
    %150 = vector.shape_cast %138 : vector<8x8xf32> to vector<1x8x8xf32>
    %151 = vector.shape_cast %147 : vector<8x8xf32> to vector<1x8x8xf32>
    %152 = tpu.concatenate %148, %149, %150, %151 in 0 : vector<1x8x8xf32>, vector<1x8x8xf32>, vector<1x8x8xf32>, vector<1x8x8xf32> -> vector<4x8x8xf32>
    "tpu.trace_start"() <{level = 10 : i32, message = "hqd,hkd->hqk"}> : () -> ()
    %cst_12 = arith.constant dense<0.000000e+00> : vector<4x8x8xf32>
    %153 = tpu.matmul %70, %111, %cst_12 {dimension_numbers = #tpu.dot_dimension_numbers<[2], [2], [1], [1], [0, 0, 0, 1, 1, 1], [0], [0]>} : vector<4x8x8xf32>, vector<4x8x8xf32>, vector<4x8x8xf32> -> vector<4x8x8xf32>
    "tpu.trace_stop"() : () -> ()
    %cst_13 = arith.constant dense<0xFF800000> : vector<4x8xf32>
    %154 = vector.multi_reduction <maximumf>, %153, %cst_13 [2] : vector<4x8x8xf32> to vector<4x8xf32>
    %155 = vector.shape_cast %154 : vector<4x8xf32> to vector<4x8x1xf32>
    %156 = vector.broadcast %155 : vector<4x8x1xf32> to vector<4x8x8xf32>
    %157 = arith.subf %153, %156 : vector<4x8x8xf32>
    %158 = math.exp %157 : vector<4x8x8xf32>
    %cst_14 = arith.constant dense<0.000000e+00> : vector<4x8xf32>
    %159 = vector.multi_reduction <add>, %158, %cst_14 [2] : vector<4x8x8xf32> to vector<4x8xf32>
    %160 = vector.shape_cast %159 : vector<4x8xf32> to vector<4x8x1xf32>
    %161 = tpu.reciprocal %160 {approx = true} : vector<4x8x1xf32> -> vector<4x8x1xf32>
    %162 = vector.broadcast %161 : vector<4x8x1xf32> to vector<4x8x8xf32>
    %163 = arith.mulf %158, %162 : vector<4x8x8xf32>
    "tpu.trace_start"() <{level = 10 : i32, message = "hqk,hkd->hqd"}> : () -> ()
    %cst_15 = arith.constant dense<0.000000e+00> : vector<4x8x8xf32>
    %164 = tpu.matmul %163, %152, %cst_15 {dimension_numbers = #tpu.dot_dimension_numbers<[2], [1], [1], [2], [0, 0, 0, 1, 1, 2], [0], [0]>} : vector<4x8x8xf32>, vector<4x8x8xf32>, vector<4x8x8xf32> -> vector<4x8x8xf32>
    "tpu.trace_stop"() : () -> ()
    %165 = vector.extract_strided_slice %164 {offsets = [0, 0, 0], sizes = [1, 8, 8], strides = [1, 1, 1]} : vector<4x8x8xf32> to vector<1x8x8xf32>
    %166 = vector.shape_cast %165 : vector<1x8x8xf32> to vector<8x8xf32>
    %167 = vector.extract_strided_slice %164 {offsets = [1, 0, 0], sizes = [1, 8, 8], strides = [1, 1, 1]} : vector<4x8x8xf32> to vector<1x8x8xf32>
    %168 = vector.shape_cast %167 : vector<1x8x8xf32> to vector<8x8xf32>
    %169 = vector.extract_strided_slice %164 {offsets = [2, 0, 0], sizes = [1, 8, 8], strides = [1, 1, 1]} : vector<4x8x8xf32> to vector<1x8x8xf32>
    %170 = vector.shape_cast %169 : vector<1x8x8xf32> to vector<8x8xf32>
    %171 = vector.extract_strided_slice %164 {offsets = [3, 0, 0], sizes = [1, 8, 8], strides = [1, 1, 1]} : vector<4x8x8xf32> to vector<1x8x8xf32>
    %172 = vector.shape_cast %171 : vector<1x8x8xf32> to vector<8x8xf32>
    %173 = tpu.concatenate %166, %168, %170, %172 in 1 : vector<8x8xf32>, vector<8x8xf32>, vector<8x8xf32>, vector<8x8xf32> -> vector<8x32xf32>
    %c0_16 = arith.constant 0 : index
    %c0_17 = arith.constant 0 : index
    %174 = vector.load %arg5[%c0_16, %c0_17] : memref<32x32xf32, #tpu.memory_space<vmem>>, vector<32x32xf32>
    %cst_18 = arith.constant dense<0.000000e+00> : vector<8x32xf32>
    %175 = tpu.matmul %173, %174, %cst_18 {dimension_numbers = #tpu.dot_dimension_numbers<[1], [0], [0], [1], [0, 0, 1, 1], [], []>} : vector<8x32xf32>, vector<32x32xf32>, vector<8x32xf32> -> vector<8x32xf32>
    %176 = arith.addf %0, %175 : vector<8x32xf32>
    %c0_19 = arith.constant 0 : index
    %c0_20 = arith.constant 0 : index
    %177 = vector.load %arg6[%c0_19, %c0_20] : memref<1x32xf32, #tpu.memory_space<vmem>>, vector<1x32xf32>
    %c0_21 = arith.constant 0 : index
    %c0_22 = arith.constant 0 : index
    %178 = vector.load %arg7[%c0_21, %c0_22] : memref<1x32xf32, #tpu.memory_space<vmem>>, vector<1x32xf32>
    %cst_23 = arith.constant dense<0.000000e+00> : vector<8xf32>
    %179 = vector.multi_reduction <add>, %176, %cst_23 [1] : vector<8x32xf32> to vector<8xf32>
    %180 = vector.shape_cast %179 : vector<8xf32> to vector<8x1xf32>
    %cst_24 = arith.constant 3.200000e+01 : f32
    %181 = vector.broadcast %cst_24 : f32 to vector<8x1xf32>
    %182 = arith.divf %180, %181 : vector<8x1xf32>
    %183 = vector.broadcast %182 : vector<8x1xf32> to vector<8x32xf32>
    %184 = arith.subf %176, %183 : vector<8x32xf32>
    %185 = arith.mulf %184, %184 : vector<8x32xf32>
    %cst_25 = arith.constant dense<0.000000e+00> : vector<8xf32>
    %186 = vector.multi_reduction <add>, %185, %cst_25 [1] : vector<8x32xf32> to vector<8xf32>
    %187 = vector.shape_cast %186 : vector<8xf32> to vector<8x1xf32>
    %cst_26 = arith.constant 3.200000e+01 : f32
    %188 = vector.broadcast %cst_26 : f32 to vector<8x1xf32>
    %189 = arith.divf %187, %188 : vector<8x1xf32>
    %190 = vector.broadcast %182 : vector<8x1xf32> to vector<8x32xf32>
    %191 = arith.subf %176, %190 : vector<8x32xf32>
    %cst_27 = arith.constant 9.99999974E-6 : f32
    %192 = vector.broadcast %cst_27 : f32 to vector<8x1xf32>
    %193 = arith.addf %189, %192 : vector<8x1xf32>
    %194 = math.rsqrt %193 : vector<8x1xf32>
    %195 = vector.broadcast %194 : vector<8x1xf32> to vector<8x32xf32>
    %196 = arith.mulf %191, %195 : vector<8x32xf32>
    %197 = vector.broadcast %177 : vector<1x32xf32> to vector<8x32xf32>
    %198 = arith.mulf %196, %197 : vector<8x32xf32>
    %199 = vector.broadcast %178 : vector<1x32xf32> to vector<8x32xf32>
    %200 = arith.addf %198, %199 : vector<8x32xf32>
    %c0_28 = arith.constant 0 : index
    %c0_29 = arith.constant 0 : index
    %201 = vector.load %arg8[%c0_28, %c0_29] : memref<32x128xf32, #tpu.memory_space<vmem>>, vector<32x128xf32>
    %cst_30 = arith.constant dense<0.000000e+00> : vector<8x128xf32>
    %202 = tpu.matmul %200, %201, %cst_30 {dimension_numbers = #tpu.dot_dimension_numbers<[1], [0], [0], [1], [0, 0, 1, 1], [], []>} : vector<8x32xf32>, vector<32x128xf32>, vector<8x128xf32> -> vector<8x128xf32>
    %c0_31 = arith.constant 0 : index
    %c0_32 = arith.constant 0 : index
    %203 = vector.load %arg9[%c0_31, %c0_32] : memref<1x128xf32, #tpu.memory_space<vmem>>, vector<1x128xf32>
    %204 = vector.broadcast %203 : vector<1x128xf32> to vector<8x128xf32>
    %205 = arith.addf %202, %204 : vector<8x128xf32>
    %cst_33 = arith.constant 0.000000e+00 : f32
    %206 = vector.broadcast %cst_33 : f32 to vector<8x128xf32>
    %207 = arith.maximumf %205, %206 : vector<8x128xf32>
    %c0_34 = arith.constant 0 : index
    %c0_35 = arith.constant 0 : index
    %208 = vector.load %arg10[%c0_34, %c0_35] : memref<128x32xf32, #tpu.memory_space<vmem>>, vector<128x32xf32>
    %cst_36 = arith.constant dense<0.000000e+00> : vector<8x32xf32>
    %209 = tpu.matmul %207, %208, %cst_36 {dimension_numbers = #tpu.dot_dimension_numbers<[1], [0], [0], [1], [0, 0, 1, 1], [], []>} : vector<8x128xf32>, vector<128x32xf32>, vector<8x32xf32> -> vector<8x32xf32>
    %c0_37 = arith.constant 0 : index
    %c0_38 = arith.constant 0 : index
    %210 = vector.load %arg11[%c0_37, %c0_38] : memref<1x32xf32, #tpu.memory_space<vmem>>, vector<1x32xf32>
    %211 = vector.broadcast %210 : vector<1x32xf32> to vector<8x32xf32>
    %212 = arith.addf %209, %211 : vector<8x32xf32>
    %213 = arith.addf %176, %212 : vector<8x32xf32>
    %c0_39 = arith.constant 0 : index
    %c0_40 = arith.constant 0 : index
    %214 = vector.load %arg12[%c0_39, %c0_40] : memref<8x32xf32, #tpu.memory_space<vmem>>, vector<8x32xf32>
    tpu.vector_store %arg12[%c0_39, %c0_40], %213 {strides = array<i32>} : memref<8x32xf32, #tpu.memory_space<vmem>>, vector<8x32xf32>,
    return
  }
  func.func @transform_0(%arg0: i32) -> (i32, i32) {
    %c0_i32 = arith.constant 0 : i32
    %c0_i32_0 = arith.constant 0 : i32
    return %arg0, %c0_i32 : i32, i32
  }
  func.func @transform_1(%arg0: i32) -> (i32, i32) {
    %c0_i32 = arith.constant 0 : i32
    %c0_i32_0 = arith.constant 0 : i32
    %c0_i32_1 = arith.constant 0 : i32
    return %c0_i32, %c0_i32_0 : i32, i32
  }
  func.func @transform_2(%arg0: i32) -> (i32, i32) {
    %c0_i32 = arith.constant 0 : i32
    %c0_i32_0 = arith.constant 0 : i32
    %c0_i32_1 = arith.constant 0 : i32
    return %c0_i32, %c0_i32_0 : i32, i32
  }
  func.func @transform_3(%arg0: i32) -> (i32, i32) {
    %c0_i32 = arith.constant 0 : i32
    %c0_i32_0 = arith.constant 0 : i32
    %c0_i32_1 = arith.constant 0 : i32
    return %c0_i32, %c0_i32_0 : i32, i32
  }
  func.func @transform_4(%arg0: i32) -> (i32, i32) {
    %c0_i32 = arith.constant 0 : i32
    %c0_i32_0 = arith.constant 0 : i32
    %c0_i32_1 = arith.constant 0 : i32
    return %c0_i32, %c0_i32_0 : i32, i32
  }
  func.func @transform_5(%arg0: i32) -> (i32, i32) {
    %c0_i32 = arith.constant 0 : i32
    %c0_i32_0 = arith.constant 0 : i32
    %c0_i32_1 = arith.constant 0 : i32
    return %c0_i32, %c0_i32_0 : i32, i32
  }
  func.func @transform_6(%arg0: i32) -> (i32, i32) {
    %c0_i32 = arith.constant 0 : i32
    %c0_i32_0 = arith.constant 0 : i32
    %c0_i32_1 = arith.constant 0 : i32
    return %c0_i32, %c0_i32_0 : i32, i32
  }
  func.func @transform_7(%arg0: i32) -> (i32, i32) {
    %c0_i32 = arith.constant 0 : i32
    %c0_i32_0 = arith.constant 0 : i32
    %c0_i32_1 = arith.constant 0 : i32
    return %c0_i32, %c0_i32_0 : i32, i32
  }
  func.func @transform_8(%arg0: i32) -> (i32, i32) {
    %c0_i32 = arith.constant 0 : i32
    %c0_i32_0 = arith.constant 0 : i32
    %c0_i32_1 = arith.constant 0 : i32
    return %c0_i32, %c0_i32_0 : i32, i32
  }
  func.func @transform_9(%arg0: i32) -> (i32, i32) {
    %c0_i32 = arith.constant 0 : i32
    %c0_i32_0 = arith.constant 0 : i32
    %c0_i32_1 = arith.constant 0 : i32
    return %c0_i32, %c0_i32_0 : i32, i32
  }
  func.func @transform_10(%arg0: i32) -> (i32, i32) {
    %c0_i32 = arith.constant 0 : i32
    %c0_i32_0 = arith.constant 0 : i32
    %c0_i32_1 = arith.constant 0 : i32
    return %c0_i32, %c0_i32_0 : i32, i32
  }
  func.func @transform_11(%arg0: i32) -> (i32, i32) {
    %c0_i32 = arith.constant 0 : i32
    %c0_i32_0 = arith.constant 0 : i32
    return %arg0, %c0_i32 : i32, i32
  }
}

</mosaic_0001>

<bundles_post_ra>
// kernel: block_forward.1
= control target key start
LH: loop header
LB: loop body
LE: loop exit
PB: predicated region body
PF: predicated region fallthrough
CT: control target
= control target key end

     0   :  { %s2446_s0 = inlined_call_operand.vmem [shape: f32[16,32], index: 0, kind: input, shape index: {}]   ;;  %s2447_s1 = inlined_call_operand.vmem [shape: f32[1,32], index: 1, kind: input, shape index: {}]   ;;  %s2448_s2 = inlined_call_operand.vmem [shape: f32[1,32], index: 2, kind: input, shape index: {}]   ;;  %s2449_s3 = inlined_call_operand.vmem [shape: f32[32,96], index: 3, kind: input, shape index: {}]   ;;  %s2450_s4 = inlined_call_operand.vmem [shape: f32[32,32], index: 4, kind: input, shape index: {}]   ;;  %s2451_s5 = inlined_call_operand.vmem [shape: f32[1,32], index: 5, kind: input, shape index: {}]   ;;  %s2452_s6 = inlined_call_operand.vmem [shape: f32[1,32], index: 6, kind: input, shape index: {}]   ;;  %s2453_s7 = inlined_call_operand.vmem [shape: f32[32,128], index: 7, kind: input, shape index: {}]   ;;  %s2454_s8 = inlined_call_operand.vmem [shape: f32[1,128], index: 8, kind: input, shape index: {}]   ;;  %s2455_s9 = inlined_call_operand.vmem [shape: f32[128,32], index: 9, kind: input, shape index: {}]   ;;  %s2456_s10 = inlined_call_operand.vmem [shape: f32[1,32], index: 10, kind: input, shape index: {}]   ;;  %s2457_s11 = inlined_call_operand.hbm [shape: f32[16,32], index: 11, kind: output, shape index: {}]  }
   0x1   :  { %2458 = sst [smem:[#allocation5_spill]] %s2446_s0 }
   0x2   :  { %16 = vsyncpa [#allocation3], 0 }
   0x3   :  { %18 = vsyncpa [#allocation3 + $0x1], 0  ;;  %s2082_s17 = smov 0   ;;  %s2084_s18 = smov 0  }
   0x4   :  { %s2086_s19 = smov 0   ;;  %s2088_s20 = smov 0  }
   0x5 LB: > { %s2103_s21 = sadd.s32 4294967295, %s2008_s20   ;;  %s1647_s22 = sadd.s32 4294967294, %s2008_s20   ;;  %s2008_s20 = sphi %s2088_s20, %s2465_s20   ;;  %s2004_s19 = sphi %s2086_s19, %s2464_s19   ;;  %s2000_s18 = sphi %s2084_s18, %s2463_s18   ;;  %s1996_s17 = sphi %s2082_s17, %s2462_s17  }
   0x6   : > { %s2107_s23 = sadd.s32 1, %s2008_s20   ;;  %s267_s24 = sadd.s32 1, %s2004_s19 }
   0x7   : > { %s264_s25 = ssub.s32 %s2008_s20, %s2107_s23  ;;  %p277_p0 = scmp.ne.s32.totalorder %s2004_s19, %s2000_s18 }
   0x8   : > { %p265_p1 = scmp.eq.s32.totalorder %s264_s25, 0  ;;  %p278_p2 = scmp.eq.s32.totalorder %s2103_s21, 1 }
   0x9   : > { %p283_p3 = scmp.ne.s32.totalorder %s2000_s18, %s1996_s17  ;;  %p284_p4 = scmp.eq.s32.totalorder %s1647_s22, 1 }
   0xa   : > { %s2118_s26 = scalar_select %p265_p1, %s2004_s19, %s267_s24  }
   0xb   : > { %p2120_p5 = por %p278_p2, %p277_p0  ;;  %p2124_p6 = por %p284_p4, %p283_p3 }
   0xc   : > { %p1650_p7 = scmp.ge.s32.totalorder %s2008_s20, 1  ;;  %p339_p8 = scmp.lt.s32.totalorder %s2008_s20, 3 }
   0xe   : > { %p340_p9 = pnand %p1650_p7, %p339_p8 }
   0xf   : > { %p378_p10 = scmp.lt.s32.totalorder (!%p340_p9), %s2103_s21, 1  ;;  %vm385_vm0 = vcmask (!%p340_p9), 261120   ;;  %s2461_s0 = sld [smem:[#allocation5_spill]] (!%p340_p9)  ;;  %v414_v7 = vld [vmem:[%s2449_s3] sm:$0xff] (!%p340_p9)  ;;  %v415_v8 = vld [vmem:[%s2449_s3 + $0x8] sm:$0xff] (!%p340_p9)  ;;  %v416_v9 = vld [vmem:[%s2449_s3 + $0x10] sm:$0xff] (!%p340_p9) }
  0x10   : > { %343 = sbr.rel (%p340_p9) target bundleno = 2671 (0xa6f), region = 64  ;;  %v2010_v10 = vmov (!%p340_p9), 0.0|0.0   ;;  %v1835_v11 = vpack.c.bf16 (!%p340_p9), %v415_v8, %v414_v7  ;;  %v417_v12 = vld [vmem:[%s2449_s3 + $0x18] sm:$0xff] (!%p340_p9)  ;;  %vm2011_vm1 = vmmov (!%p340_p9), 0   ;;  %v2012_v13 = vmov (!%p340_p9), 0.0   ;;  %s2013_s22 = smov (!%p340_p9), 112  }
  0x11   : > { %1834 = vmatprep.subr.bf16.mxu1 (!%p340_p9), %v2010_v10  ;;  %1734 = vmatprep.mubr.msk.f32.mxu1 (!%p340_p9), %vm2011_vm1, %v2012_v13  ;;  %v1838_v14 = vpack.c.bf16 (!%p340_p9), %v417_v12, %v416_v9  ;;  %v1653_v19 = vld [vmem:[%s2447_s1] ss:$0 sm:$0xff] (!%p340_p9)  ;;  %s2014_s24 = smov (!%p340_p9), 104   ;;  %s2015_s25 = smov (!%p340_p9), 120   ;;  %vm517_vm2 = vcmask (!%p340_p9), 1040384   ;;  %vm519_vm3 = vcmask (!%p340_p9), 1041408  }
  0x12   : > { %1747 = vmatprep.subr.mxu0 (!%p340_p9), %v2012_v13  ;;  %1749 = vmatprep.mubr.msk.f32.mxu0 (!%p340_p9), %vm2011_vm1, %v2012_v13  ;;  %v1654_v21 = vld [vmem:[%s2448_s2] ss:$0 sm:$0xff] (!%p340_p9)  ;;  %vm521_vm4 = vcmask (!%p340_p9), 1042432   ;;  %vm523_vm5 = vcmask (!%p340_p9), 1043456   ;;  %vm525_vm6 = vcmask (!%p340_p9), 1044480   ;;  %vm527_vm7 = vcmask (!%p340_p9), 1045504  }
  0x13   : > { %1836 = vmatpush3.bf16.msra.mxu1 (!%p340_p9), %v1835_v11  ;;  %vm529_vm8 = vcmask (!%p340_p9), 1046528   ;;  %vm616_vm9 = vcmask (!%p340_p9), 64512   ;;  %s2020_s12 = smov (!%p340_p9), 24   ;;  %vm1283_vm10 = vcmask (!%p340_p9), 130048   ;;  %vm1285_vm11 = vcmask (!%p340_p9), 195584   ;;  %s1675_s13 = sshll.u32 (!%p340_p9), %s2103_s21, 7 }
  0x14   : > { %1837 = vmatprep.subr.bf16.mxu1 (!%p340_p9), %v2010_v10 }
  0x17   : > { %s379_s29 = scalar_select %p378_p10, %s2103_s21, 1  ;;  %1839 = vmatpush3.bf16.msra.mxu1 %v1838_v14 }
  0x18   : > { %1737 = vmatprep.subr.mxu1 %v2012_v13 }
  0x19   : > { %s1652_s30 = sshll.u32 %s379_s29, 3  ;;  %s2016_s29 = smov 96  }
  0x1a   : > { %s381_s14 = scalar_lea.vmem %s2461_s0, %s1652_s30  ;;  %s2017_s30 = smov 64  }
  0x1b   : > { %v2135_v0 = vld [vmem:[%s381_s14] sm:$0xff] }
  0x1c   : > { %v386_v1 = vsel %vm385_vm0, %v2135_v0, 0.0 }
  0x1d   : > { %387 = vadd.xlane.f32.xlu0 %v386_v1 }
  0xaa   : > { %v388_v2 = vpop.xlane.xlu0 %387 }
  0xab   : > { %v390_v3 = vmul.f32 0.03125, %v388_v2 }
  0xad   : > { %v391_v4 = vsub.f32 %v2135_v0, %v390_v3 }
  0xaf   : > { %v392_v5 = vmul.f32 %v391_v4, %v391_v4 }
  0xb1   : > { %v393_v6 = vsel %vm385_vm0, %v392_v5, 0.0 }
  0xb2   : > { %394 = vadd.xlane.f32.xlu0 %v393_v6 }
 0x13f   : > { %v395_v15 = vpop.xlane.xlu0 %394 }
 0x140   : > { %v396_v16 = vmul.f32 0.03125, %v395_v15 }
 0x142   : > { %v397_v17 = vadd.f32 1e-05, %v396_v16 }
 0x144   : > { %1926 = vrsqrt.f32 %v397_v17 }
 0x14e   : > { %v1927_v18 = vpop.eup %1926 }
 0x14f   : > { %v399_v20 = vmul.f32 %v1927_v18, %v391_v4 }
 0x151   : > { %v406_v22 = vmul.f32 %v1653_v19, %v399_v20 }
 0x153   : > { %v413_v23 = vadd.f32 %v1654_v21, %v406_v22 }
 0x155   : > { %1735 = vmatmul.mubr.msk.f32.vlgmr.msra.gmra.mrb[0].mxu1 %vm385_vm0, %v413_v23 }
 0x156   : > { %1739 = vmatprep.mubr.msk.f32.mxu1 %vm2011_vm1, %v2012_v13 }
 0x228   : > { %v487_v24 = vpop.f32.mrb[0].mxu1 }
 0x229   : > { %536 = vrot.lane.b32.xlu1 %v487_v24, %s2013_s22  ;;  %v1736_v25 = vpop.f32.mrb[1].mxu1  ;;  %v500_v26 = vrot.slane %v487_v24, 5  ;;  %v2171_v27 = vrot.slane %v487_v24, 3  ;;  %v2174_v28 = vrot.slane %v487_v24, 7  ;;  %v513_v29 = vrot.slane %v487_v24, 2 }
 0x22a   : > { %v2178_v30 = vrot.slane %v487_v24, 6  ;;  %v505_v31 = vrot.slane %v487_v24, 4  ;;  %v532_v32 = vrot.slane %v487_v24, 1 }
 0x22b   : > { %501 = vrot.lane.b32.xlu0 %v500_v26, %s2014_s24 }
 0x22d   : > { %570 = vrot.lane.b32.xlu1 %v487_v24, %s2015_s25 }
 0x22f   : > { %560 = vrot.lane.b32.xlu0 %v2171_v27, %s2015_s25 }
 0x231   : > { %493 = vrot.lane.b32.xlu1 %v2174_v28, %s2015_s25 }
 0x233   : > { %563 = vrot.lane.b32.xlu0 %v513_v29, %s2013_s22 }
 0x235   : > { %497 = vrot.lane.b32.xlu1 %v2178_v30, %s2013_s22 }
 0x237   : > { %546 = vrot.lane.b32.xlu0 %v500_v26, %s2013_s22 }
 0x239   : > { %506 = vrot.lane.b32.xlu1 %v505_v31, %s2015_s25 }
 0x23b   : > { %590 = vrot.lane.b32.xlu0 %v505_v31, %s2013_s22 }
 0x23d   : > { %533 = vrot.lane.b32.xlu1 %v532_v32, %s2015_s25 }
 0x23f   : > { %593 = vrot.lane.b32.xlu0 %v2171_v27, %s2014_s24 }
 0x241   : > { %510 = vrot.lane.b32.xlu1 %v2171_v27, %s2013_s22 }
 0x243   : > { %573 = vrot.lane.b32.xlu0 %v2174_v28, %s2013_s22 }
 0x245   : > { %514 = vrot.lane.b32.xlu1 %v513_v29, %s2014_s24 }
 0x247   : > { %576 = vrot.lane.b32.xlu0 %v2178_v30, %s2014_s24 }
 0x249   : > { %539 = vrot.lane.b32.xlu1 %v2174_v28, %s2014_s24 }
 0x24b   : > { %603 = vrot.lane.b32.xlu0 %v487_v24, %s2014_s24 }
 0x24d   : > { %543 = vrot.lane.b32.xlu1 %v2178_v30, %s2015_s25 }
 0x251   : > { %587 = vrot.lane.b32.xlu1 %v500_v26, %s2015_s25 }
 0x255   : > { %566 = vrot.lane.b32.xlu1 %v532_v32, %s2014_s24 }
 0x259   : > { %549 = vrot.lane.b32.xlu1 %v505_v31, %s2014_s24  ;;  %s2403_s24 = scalar_lea.hbm %s2457_s11, %s1675_s13 }
 0x25d   : > { %597 = vrot.lane.b32.xlu1 %v513_v29, %s2015_s25  ;;  %s375_s25 = sand.u32 1, %s2000_s18  }
 0x261   : > { %600 = vrot.lane.b32.xlu1 %v532_v32, %s2013_s22 }
 0x29b   : > { %v537_v33 = vpop.permute.xlu1 %536 }
 0x29d   : > { %v502_v35 = vpop.permute.xlu0 %501 }
 0x29f   : > { %v571_v34 = vpop.permute.xlu1 %570 }
 0x2a1   : > { %v561_v37 = vpop.permute.xlu0 %560 }
 0x2a2   : > { %v579_v61 = vsel %vm517_vm2, %v505_v31, %v561_v37 }
 0x2a3   : > { %v494_v36 = vpop.permute.xlu1 %493 }
 0x2a4   : > { %v518_v40 = vsel %vm517_vm2, %v487_v24, %v494_v36 }
 0x2a5   : > { %v564_v41 = vpop.permute.xlu0 %563 }
 0x2a6   : > { %v580_v62 = vsel %vm519_vm3, %v579_v61, %v564_v41 }
 0x2a7   : > { %v498_v38 = vpop.permute.xlu1 %497 }
 0x2a8   : > { %v520_v42 = vsel %vm519_vm3, %v518_v40, %v498_v38 }
 0x2a9   : > { %v522_v44 = vsel %vm521_vm4, %v520_v42, %v502_v35  ;;  %v547_v45 = vpop.permute.xlu0 %546 }
 0x2aa   : > { %v524_v46 = vsel %vm523_vm5, %v522_v44, %v500_v26 }
 0x2ab   : > { %v507_v39 = vpop.permute.xlu1 %506 }
 0x2ac   : > { %v526_v48 = vsel %vm525_vm6, %v524_v46, %v507_v39 }
 0x2ad   : > { %v591_v52 = vpop.permute.xlu0 %590 }
 0x2af   : > { %v534_v43 = vpop.permute.xlu1 %533 }
 0x2b0   : > { %v552_v56 = vsel %vm517_vm2, %v513_v29, %v534_v43 }
 0x2b1   : > { %v594_v54 = vpop.permute.xlu0 %593  ;;  %v553_v57 = vsel %vm519_vm3, %v552_v56, %v537_v33 }
 0x2b3   : > { %v511_v47 = vpop.permute.xlu1 %510 }
 0x2b4   : > { %v528_v49 = vsel %vm527_vm7, %v526_v48, %v511_v47 }
 0x2b5   : > { %v574_v60 = vpop.permute.xlu0 %573 }
 0x2b7   : > { %v515_v50 = vpop.permute.xlu1 %514 }
 0x2b8   : > { %v2200_v51 = vsel %vm529_vm8, %v528_v49, %v515_v50 }
 0x2b9   : > { %614 = vrot.lane.b32.xlu1 %v2200_v51, %s2016_s29  ;;  %v577_v7 = vpop.permute.xlu0 %576 }
 0x2bb   : > { %v540_v53 = vpop.permute.xlu1 %539 }
 0x2bc   : > { %v554_v59 = vsel %vm521_vm4, %v553_v57, %v540_v53 }
 0x2bd   : > { %v555_v63 = vsel %vm523_vm5, %v554_v59, %v2174_v28  ;;  %v604_v21 = vpop.permute.xlu0 %603 }
 0x2bf   : > { %v544_v55 = vpop.permute.xlu1 %543 }
 0x2c0   : > { %v556_v2 = vsel %vm525_vm6, %v555_v63, %v544_v55 }
 0x2c1   : > { %v557_v11 = vsel %vm527_vm7, %v556_v2, %v547_v45 }
 0x2c3   : > { %v588_v58 = vpop.permute.xlu1 %587 }
 0x2c4   : > { %v606_v4 = vsel %vm517_vm2, %v2178_v30, %v588_v58 }
 0x2c5   : > { %v607_v12 = vsel %vm519_vm3, %v606_v4, %v591_v52 }
 0x2c6   : > { %v608_v16 = vsel %vm521_vm4, %v607_v12, %v594_v54 }
 0x2c7   : > { %v567_v1 = vpop.permute.xlu1 %566  ;;  %v609_v18 = vsel %vm523_vm5, %v608_v16, %v2171_v27 }
 0x2c8   : > { %v581_v3 = vsel %vm521_vm4, %v580_v62, %v567_v1 }
 0x2c9   : > { %v582_v5 = vsel %vm523_vm5, %v581_v3, %v532_v32 }
 0x2ca   : > { %v583_v6 = vsel %vm525_vm6, %v582_v5, %v571_v34 }
 0x2cb   : > { %v550_v8 = vpop.permute.xlu1 %549  ;;  %v584_v9 = vsel %vm527_vm7, %v583_v6, %v574_v60 }
 0x2cc   : > { %v2221_v14 = vsel %vm529_vm8, %v584_v9, %v577_v7  ;;  %v558_v15 = vsel %vm529_vm8, %v557_v11, %v550_v8 }
 0x2cd   : > { %769 = vrot.lane.b32.xlu1 %v2221_v14, %s2016_s29  ;;  %692 = vrot.lane.b32.xlu0 %v558_v15, %s2016_s29 }
 0x2cf   : > { %v598_v17 = vpop.permute.xlu1 %597 }
 0x2d0   : > { %v610_v19 = vsel %vm525_vm6, %v609_v18, %v598_v17  ;;  %v1287_v17 = vld [vmem:[%s2450_s4] sm:$0xff]  ;;  %v1288_v18 = vld [vmem:[%s2450_s4 + $0x8] sm:$0xff] }
 0x2d3   : > { %v601_v20 = vpop.permute.xlu1 %600 }
 0x2d4   : > { %v611_v22 = vsel %vm527_vm7, %v610_v19, %v601_v20  ;;  %v1841_v19 = vpack.c.bf16 %v1288_v18, %v1287_v17  ;;  %v1289_v20 = vld [vmem:[%s2450_s4 + $0x10] sm:$0xff]  ;;  %v1494_v17 = vld [vmem:[%s2455_s9 + $0x78] sm:$0xff] }
 0x2d5   : > { %v2233_v23 = vsel %vm529_vm8, %v611_v22, %v604_v21  ;;  %v1290_v21 = vld [vmem:[%s2450_s4 + $0x18] sm:$0xff] }
 0x2d6   : > { %846 = vrot.lane.b32.xlu0 %v2233_v23, %s2016_s29  ;;  %v1844_v22 = vpack.c.bf16 %v1290_v21, %v1289_v20  ;;  %s2018_s29 = smov 8  }
 0x32b   : > { %v615_v24 = vpop.permute.xlu1 %614 }
 0x32c   : > { %1738 = vmatpush3.xpose.msk.msra.mxu1 %vm616_vm9, %v615_v24 }
 0x32d   : > { %1742 = vmatprep.subr.mxu1 %v2012_v13 }
 0x32f   : > { %1740 = vmatmul.mubr.msk.f32.vlgmr.msra.gmra.mrb[2].mxu1 %vm616_vm9, %v2200_v51 }
 0x330   : > { %1744 = vmatprep.mubr.msk.f32.mxu1 %vm2011_vm1, %v2012_v13 }
 0x33f   : > { %v693_v25 = vpop.permute.xlu0 %692  ;;  %v770_v26 = vpop.permute.xlu1 %769 }
 0x340   : > { %1743 = vmatpush3.xpose.msk.msra.mxu1 %vm616_vm9, %v693_v25  ;;  %1748 = vmatpush3.xpose.msk.msra.mxu0 %vm616_vm9, %v770_v26 }
 0x341   : > { %1752 = vmatprep.subr.mxu1 %v2012_v13  ;;  %1757 = vmatprep.subr.mxu0 %v2012_v13 }
 0x343   : > { %1745 = vmatmul.mubr.msk.f32.vlgmr.msra.gmra.mrb[4].mxu1 %vm616_vm9, %v558_v15  ;;  %1750 = vmatmul.mubr.msk.f32.vlgmr.msra.gmra.mrb[0].mxu0 %vm616_vm9, %v2221_v14 }
 0x344   : > { %1754 = vmatprep.mubr.msk.f32.mxu1 %vm2011_vm1, %v2012_v13  ;;  %1759 = vmatprep.mubr.msk.f32.mxu0 %vm2011_vm1, %v2012_v13 }
 0x348   : > { %v847_v27 = vpop.permute.xlu0 %846 }
 0x349   : > { %1753 = vmatpush3.xpose.msk.msra.mxu1 %vm616_vm9, %v847_v27 }
 0x34a   : > { %1762 = vmatprep.subr.mxu1 %v2012_v13 }
 0x34c   : > { %1755 = vmatmul.mubr.msk.f32.vlgmr.msra.gmra.mrb[6].mxu1 %vm616_vm9, %v2233_v23 }
 0x34d   : > { %1764 = vmatprep.mubr.msk.f32.mxu1 %vm2011_vm1, %v2012_v13 }
 0x402   : > { %v687_v28 = vpop.f32.mrb[2].mxu1 }
 0x403   : > { %v1741_v29 = vpop.f32.mrb[3].mxu1  ;;  %v922_v30 = vsel %vm616_vm9, %v687_v28, -inf }
 0x404   : > { %923 = vmax.xlane.f32.xlu1 %v922_v30 }
 0x416   : > { %v764_v31 = vpop.f32.mrb[4].mxu1  ;;  %v841_v32 = vpop.f32.mrb[0].mxu0 }
 0x417   : > { %v1746_v33 = vpop.f32.mrb[5].mxu1  ;;  %v1751_v34 = vpop.f32.mrb[1].mxu0  ;;  %v925_v35 = vsel %vm616_vm9, %v764_v31, -inf  ;;  %v928_v36 = vsel %vm616_vm9, %v841_v32, -inf }
 0x418   : > { %926 = vmax.xlane.f32.xlu0 %v925_v35 }
 0x41c   : > { %929 = vmax.xlane.f32.xlu0 %v928_v36 }
 0x41f   : > { %v918_v37 = vpop.f32.mrb[6].mxu1 }
 0x420   : > { %v1756_v38 = vpop.f32.mrb[7].mxu1  ;;  %v931_v39 = vsel %vm616_vm9, %v918_v37, -inf }
 0x421   : > { %932 = vmax.xlane.f32.xlu1 %v931_v39 }
 0x432   : > { %966 = vrot.lane.b32.xlu0 %v2200_v51, %s2017_s30  ;;  %1042 = vrot.lane.b32.xlu1 %v558_v15, %s2017_s30 }
 0x491   : > { %v924_v40 = vpop.xlane.xlu1 %923 }
 0x492   : > { %v934_v41 = vsub.f32 %v687_v28, %v924_v40 }
 0x494   : > { %v938_v42 = vmul.f32 1.442695, %v934_v41 }
 0x496   : > { %1928 = vpow2.f32 %v938_v42 }
 0x4a0   : > { %v1929_v43 = vpop.eup %1928 }
 0x4a1   : > { %v946_v44 = vsel %vm616_vm9, %v1929_v43, 0.0 }
 0x4a2   : > { %947 = vadd.xlane.f32.xlu0 %v946_v44 }
 0x4a5   : > { %v927_v45 = vpop.xlane.xlu0 %926 }
 0x4a6   : > { %v935_v46 = vsub.f32 %v764_v31, %v927_v45  ;;  %v1396_v45 = vld [vmem:[%s2453_s7 + $0x10] sm:$0xff] }
 0x4a8   : > { %v940_v47 = vmul.f32 1.442695, %v935_v46  ;;  %v1397_v46 = vld [vmem:[%s2453_s7 + $0x18] sm:$0xff] }
 0x4a9   : > { %v930_v48 = vpop.xlane.xlu0 %929 }
 0x4aa   : > { %1930 = vpow2.f32 %v940_v47  ;;  %v936_v49 = vsub.f32 %v841_v32, %v930_v48  ;;  %v1850_v47 = vpack.c.bf16 %v1397_v46, %v1396_v45  ;;  %v1479_v48 = vld [vmem:[%s2455_s9] sm:$0xff] }
 0x4ac   : > { %v942_v50 = vmul.f32 1.442695, %v936_v49  ;;  %v1480_v49 = vld [vmem:[%s2455_s9 + $0x8] sm:$0xff] }
 0x4ad   : > { %v967_v52 = vpop.permute.xlu0 %966 }
 0x4ae   : > { %1932 = vpow2.f32 %v942_v50  ;;  %1758 = vmatpush3.msra.mxu0 %v967_v52  ;;  %v933_v51 = vpop.xlane.xlu1 %932  ;;  %v1481_v50 = vld [vmem:[%s2455_s9 + $0x10] sm:$0xff]  ;;  %v1853_v52 = vpack.c.bf16 %v1480_v49, %v1479_v48 }
 0x4af   : > { %v937_v53 = vsub.f32 %v918_v37, %v933_v51  ;;  %1767 = vmatprep.subr.mxu0 %v2012_v13  ;;  %v1482_v51 = vld [vmem:[%s2455_s9 + $0x18] sm:$0xff] }
 0x4b1   : > { %v944_v54 = vmul.f32 1.442695, %v937_v53  ;;  %v1856_v53 = vpack.c.bf16 %v1482_v51, %v1481_v50 }
 0x4b2   : > { %v1043_v55 = vpop.permute.xlu1 %1042 }
 0x4b3   : > { %1934 = vpow2.f32 %v944_v54  ;;  %1763 = vmatpush3.msra.mxu1 %v1043_v55  ;;  %v1483_v54 = vld [vmem:[%s2455_s9 + $0x20] sm:$0xff]  ;;  %v1484_v55 = vld [vmem:[%s2455_s9 + $0x28] sm:$0xff] }
 0x4b4   : > { %v1931_v56 = vpop.eup %1930  ;;  %1772 = vmatprep.subr.mxu1 %v2012_v13 }
 0x4b5   : > { %v949_v57 = vsel %vm616_vm9, %v1931_v56, 0.0 }
 0x4b6   : > { %950 = vadd.xlane.f32.xlu1 %v949_v57  ;;  %v1485_v57 = vld [vmem:[%s2455_s9 + $0x30] sm:$0xff] }
 0x4b8   : > { %v1933_v58 = vpop.eup %1932 }
 0x4b9   : > { %v952_v59 = vsel %vm616_vm9, %v1933_v58, 0.0 }
 0x4ba   : > { %953 = vadd.xlane.f32.xlu0 %v952_v59 }
 0x4bd   : > { %v1935_v60 = vpop.eup %1934 }
 0x4be   : > { %v955_v61 = vsel %vm616_vm9, %v1935_v60, 0.0 }
 0x4bf   : > { %956 = vadd.xlane.f32.xlu1 %v955_v61  ;;  %v1488_v61 = vld [vmem:[%s2455_s9 + $0x48] sm:$0xff] }
 0x4d0   : > { %1194 = vrot.lane.b32.xlu0 %v2233_v23, %s2017_s30  ;;  %1118 = vrot.lane.b32.xlu1 %v2221_v14, %s2017_s30  ;;  %s2019_s30 = smov 16  }
 0x52f   : > { %v948_v62 = vpop.xlane.xlu0 %947 }
 0x530   : > { %1936 = vrcp.f32 %v948_v62 }
 0x53a   : > { %v1937_v63 = vpop.eup %1936 }
 0x53b   : > { %v962_v1 = vmul.f32 %v1937_v63, %v1929_v43  ;;  %v1489_v63 = vld [vmem:[%s2455_s9 + $0x50] sm:$0xff] }
 0x53d   : > { %1760 = vmatmul.mubr.msk.f32.vlgmr.msra.gmra.mrb[2].mxu0 %vm616_vm9, %v962_v1  ;;  %v1490_v1 = vld [vmem:[%s2455_s9 + $0x58] sm:$0xff] }
 0x53e   : > { %1769 = vmatprep.mubr.msk.f32.mxu0 %vm2011_vm1, %v2012_v13 }
 0x543   : > { %v951_v2 = vpop.xlane.xlu1 %950 }
 0x544   : > { %1938 = vrcp.f32 %v951_v2  ;;  %v1868_v2 = vpack.c.bf16 %v1490_v1, %v1489_v63 }
 0x547   : > { %v954_v3 = vpop.xlane.xlu0 %953 }
 0x548   : > { %1940 = vrcp.f32 %v954_v3  ;;  %v1491_v3 = vld [vmem:[%s2455_s9 + $0x60] sm:$0xff] }
 0x54b   : > { %v1195_v8 = vpop.permute.xlu0 %1194 }
 0x54c   : > { %v957_v4 = vpop.xlane.xlu1 %956 }
 0x54d   : > { %1942 = vrcp.f32 %v957_v4  ;;  %v1492_v4 = vld [vmem:[%s2455_s9 + $0x68] sm:$0xff] }
 0x54e   : > { %v1939_v5 = vpop.eup %1938 }
 0x54f   : > { %v963_v6 = vmul.f32 %v1939_v5, %v1931_v56  ;;  %v1859_v56 = vpack.c.bf16 %v1484_v55, %v1483_v54  ;;  %v1871_v5 = vpack.c.bf16 %v1492_v4, %v1491_v3 }
 0x550   : > { %v1119_v7 = vpop.permute.xlu1 %1118 }
 0x551   : > { %1765 = vmatmul.mubr.msk.f32.vlgmr.msra.gmra.mrb[8].mxu1 %vm616_vm9, %v963_v6  ;;  %1768 = vmatpush3.msra.mxu0 %v1119_v7 }
 0x552   : > { %v1941_v9 = vpop.eup %1940  ;;  %1773 = vmatpush3.msra.mxu1 %v1195_v8  ;;  %1774 = vmatprep.mubr.msk.f32.mxu1 %vm2011_vm1, %v2012_v13 }
 0x553   : > { %v964_v11 = vmul.f32 %v1941_v9, %v1933_v58  ;;  %1840 = vmatprep.subr.bf16.mxu1 %v2010_v10  ;;  %1852 = vmatprep.subr.bf16.mxu0 %v2010_v10  ;;  %v1486_v58 = vld [vmem:[%s2455_s9 + $0x38] sm:$0xff] }
 0x554   : > { %v1862_v59 = vpack.c.bf16 %v1486_v58, %v1485_v57 }
 0x555   : > { %1770 = vmatmul.mubr.msk.f32.vlgmr.msra.gmra.mrb[4].mxu0 %vm616_vm9, %v964_v11  ;;  %v1669_v11 = vld [vmem:[%s2451_s5] ss:$0 sm:$0xff] }
 0x556   : > { %1831 = vmatprep.mubr.msk.f32.mxu0 %vm2011_vm1, %v2012_v13  ;;  %1854 = vmatpush3.bf16.msra.mxu0 %v1853_v52 }
 0x557   : > { %v1943_v12 = vpop.eup %1942  ;;  %1855 = vmatprep.subr.bf16.mxu0 %v2010_v10 }
 0x558   : > { %v965_v14 = vmul.f32 %v1943_v12, %v1935_v60  ;;  %v1487_v60 = vld [vmem:[%s2455_s9 + $0x40] sm:$0xff] }
 0x559   : > { %v1865_v62 = vpack.c.bf16 %v1488_v61, %v1487_v60 }
 0x55a   : > { %1775 = vmatmul.mubr.msk.f32.vlgmr.msra.gmra.mrb[10].mxu1 %vm616_vm9, %v965_v14  ;;  %1857 = vmatpush3.bf16.msra.mxu0 %v1856_v53  ;;  %v1670_v14 = vld [vmem:[%s2452_s6] ss:$0 sm:$0xff] }
 0x55b   : > { %1785 = vmatprep.mubr.msk.f32.mxu1 %vm2011_vm1, %v2012_v13  ;;  %1842 = vmatpush3.bf16.msra.mxu1 %v1841_v19  ;;  %v1671_v19 = vld [vmem:[%s2454_s8] ss:$0 sm:$0xff] }
 0x55c   : > { %1843 = vmatprep.subr.bf16.mxu1 %v2010_v10  ;;  %1858 = vmatprep.subr.bf16.mxu0 %v2010_v10 }
 0x55e   : > { %1860 = vmatpush3.bf16.msra.mxu0 %v1859_v56 }
 0x55f   : > { %1845 = vmatpush3.bf16.msra.mxu1 %v1844_v22  ;;  %1861 = vmatprep.subr.bf16.mxu0 %v2010_v10 }
 0x560   : > { %1846 = vmatprep.subr.bf16.mxu1 %v2010_v10 }
 0x562   : > { %1863 = vmatpush3.bf16.msra.mxu0 %v1862_v59 }
 0x563   : > { %1864 = vmatprep.subr.bf16.mxu0 %v2010_v10 }
 0x566   : > { %1866 = vmatpush3.bf16.msra.mxu0 %v1865_v62 }
 0x567   : > { %1867 = vmatprep.subr.bf16.mxu0 %v2010_v10 }
 0x56a   : > { %1869 = vmatpush3.bf16.msra.mxu0 %v1868_v2 }
 0x56b   : > { %1870 = vmatprep.subr.bf16.mxu0 %v2010_v10 }
 0x56e   : > { %1872 = vmatpush3.bf16.msra.mxu0 %v1871_v5 }
 0x56f   : > { %1873 = vmatprep.subr.bf16.mxu0 %v2010_v10 }
 0x610   : > { %v1038_v15 = vpop.f32.mrb[2].mxu0 }
 0x611   : > { %v1761_v16 = vpop.f32.mrb[3].mxu0 }
 0x624   : > { %v1114_v23 = vpop.f32.mrb[8].mxu1 }
 0x625   : > { %1271 = vrot.lane.b32.xlu1 %v1114_v23, %s2018_s29  ;;  %v1766_v24 = vpop.f32.mrb[9].mxu1  ;;  %s1651_s29 = sshll.u32 %s375_s25, 3 }
 0x626   : > { %v1673_v24 = vld [vmem:[%s2456_s10] ss:$0 sm:$0xff]  ;;  %s377_s14 = scalar_lea.vmem [#allocation2], %s1651_s29  ;;  %s2021_s29 = smov [#allocation2]  }
 0x627   : > { %s1588_s15 = sshll.u32 %s377_s14, 4  ;;  %s2405_s15 = int_to_ptr.vmem [resolvable:$true] %s1588_s15 }
 0x628   : > { %v1190_v25 = vpop.f32.mrb[4].mxu0  ;;  %s1946_s21 = scalar_lea.vmem %s2405_s15, 128 }
 0x629   : > { %1275 = vrot.lane.b32.xlu0 %v1190_v25, %s2019_s30  ;;  %v1771_v26 = vpop.f32.mrb[5].mxu0  ;;  %s1575_s30 = scalar_lea.sflag [#allocation3], %s375_s25  ;;  %p1947_p11 = scmp.ne.s32.totalorder %s2405_s15, %s1946_s21 }
 0x62b   : > { %p1948_p12 = pnand %p1947_p11, %p2120_p5 }
 0x62d   : > { %v1266_v27 = vpop.f32.mrb[10].mxu1  ;;  %p1949_p13 = pneg %p1948_p12 }
 0x62e   : > { %1279 = vrot.lane.b32.xlu1 %v1266_v27, %s2020_s12  ;;  %v1776_v28 = vpop.f32.mrb[11].mxu1  ;;  %s1950_s12 = sshll.u32 %s2021_s29, 4  ;;  %s1951_s12 = int_to_ptr.vmem [resolvable:$false] %s1950_s12 }
 0x62f   : > { %s1952_s0 = scalar_lea.vmem %s1951_s12, 256  ;;  %p1953_p0 = scmp.lt.s32.totalorder %s2405_s15, %s1951_s12 }
 0x630   : > { %p1954_p1 = scmp.lt.s32.totalorder %s1952_s0, %s1946_s21 }
 0x632   : > { %p1955_p2 = por %p1954_p1, %p1953_p0 }
 0x634   : > { %p1956_p3 = pnand %p1955_p2, %p1949_p13 }
 0x697   : > { %v1272_v29 = vpop.permute.xlu1 %1271 }
 0x698   : > { %v1282_v31 = vsel %vm616_vm9, %v1038_v15, %v1272_v29 }
 0x69b   : > { %v1276_v30 = vpop.permute.xlu0 %1275 }
 0x69c   : > { %v1284_v32 = vsel %vm1283_vm10, %v1282_v31, %v1276_v30 }
 0x6a0   : > { %v1280_v33 = vpop.permute.xlu1 %1279 }
 0x6a1   : > { %v1286_v34 = vsel %vm1285_vm11, %v1284_v32, %v1280_v33 }
 0x6a2   : > { %1786 = vmatmul.mubr.msk.f32.vlgmr.msra.gmra.mrb[12].mxu1 %vm385_vm0, %v1286_v34 }
 0x6a3   : > { %1796 = vmatprep.mubr.msk.f32.mxu1 %vm2011_vm1, %v2012_v13  ;;  %v1394_v13 = vld [vmem:[%s2453_s7] sm:$0xff] }
 0x775   : > { %v1360_v35 = vpop.f32.mrb[12].mxu1 }
 0x776   : > { %v2310_v36 = vadd.f32 %v1360_v35, %v2135_v0  ;;  %v1787_v37 = vpop.f32.mrb[13].mxu1  ;;  %v1395_v0 = vld [vmem:[%s2453_s7 + $0x8] sm:$0xff] }
 0x777   : > { %v1847_v44 = vpack.c.bf16 %v1395_v0, %v1394_v13 }
 0x778   : > { %v1367_v38 = vsel %vm385_vm0, %v2310_v36, 0.0 }
 0x779   : > { %1368 = vadd.xlane.f32.xlu0 %v1367_v38  ;;  %1848 = vmatpush3.bf16.msra.mxu1 %v1847_v44 }
 0x77a   : > { %1849 = vmatprep.subr.bf16.mxu1 %v2010_v10  ;;  %v1493_v10 = vld [vmem:[%s2455_s9 + $0x70] sm:$0xff] }
 0x77b   : > { %v1874_v18 = vpack.c.bf16 %v1494_v17, %v1493_v10 }
 0x77d   : > { %1851 = vmatpush3.bf16.msra.mxu1 %v1850_v47  ;;  %1875 = vmatpush3.bf16.msra.mxu0 %v1874_v18 }
 0x806   : > { %v1369_v39 = vpop.xlane.xlu0 %1368 }
 0x807   : > { %v1370_v40 = vmul.f32 0.03125, %v1369_v39 }
 0x809   : > { %v1371_v41 = vsub.f32 %v2310_v36, %v1370_v40 }
 0x80b   : > { %v1372_v42 = vmul.f32 %v1371_v41, %v1371_v41 }
 0x80d   : > { %v1373_v43 = vsel %vm385_vm0, %v1372_v42, 0.0 }
 0x80e   : > { %1374 = vadd.xlane.f32.xlu1 %v1373_v43 }
 0x89b   : > { %v1375_v6 = vpop.xlane.xlu1 %1374 }
 0x89c   : > { %v1376_v7 = vmul.f32 0.03125, %v1375_v6 }
 0x89e   : > { %v1377_v8 = vadd.f32 1e-05, %v1376_v7 }
 0x8a0   : > { %1944 = vrsqrt.f32 %v1377_v8 }
 0x8aa   : > { %v1945_v9 = vpop.eup %1944 }
 0x8ab   : > { %v1379_v12 = vmul.f32 %v1945_v9, %v1371_v41 }
 0x8ad   : > { %v1386_v15 = vmul.f32 %v1669_v11, %v1379_v12 }
 0x8af   : > { %v1393_v16 = vadd.f32 %v1670_v14, %v1386_v15 }
 0x8b1   : > { %1797 = vmatmul.mubr.msk.f32.vlgmr.msra.gmra.mrb[14].mxu1 %vm385_vm0, %v1393_v16 }
 0x984   : > { %v1474_v20 = vpop.f32.mrb[14].mxu1 }
 0x985   : > { %v1475_v21 = vadd.f32 %v1671_v19, %v1474_v20  ;;  %v1798_v22 = vpop.f32.mrb[15].mxu1 }
 0x987   : > { %v1478_v23 = vmax.f32 %v1475_v21, 0.0 }
 0x989   : > { %1832 = vmatmul.mubr.f32.vlgmr.msra.gmra.mrb[6].mxu0 %v1478_v23 }
 0xa5c   : > { %v1568_v25 = vpop.f32.mrb[6].mxu0 }
 0xa5d   : > { %v1569_v26 = vadd.f32 %v1673_v24, %v1568_v25  ;;  %v1833_v27 = vpop.f32.mrb[7].mxu0 }
 0xa5f   : > { %v1572_v28 = vadd.f32 %v1569_v26, %v2310_v36 }
 0xa61   : > { %1573 = vst.msk [vmem:[%s377_s14] sm:$0xff] %vm385_vm0, %v1572_v28 }
 0xa62   : > { %1959 = shalt.err (!%p1956_p3)
}
 0xa63   : > { %s1960_s25 = scalar_lea.hbm %s2403_s24, 128  ;;  %s1964_s16 = scalar_lea.hbm %s2457_s11, 256 }
 0xa64   : > { %p1961_p4 = scmp.ne.s32.totalorder %s2403_s24, %s1960_s25  ;;  %p1965_p9 = scmp.lt.u32.totalorder %s2403_s24, %s2457_s11 }
 0xa65   : > { %p1966_p10 = scmp.lt.u32.totalorder %s1964_s16, %s1960_s25  ;;  %p1968_p12 = scmp.lt.u32.totalorder %s1960_s25, %s2403_s24 }
 0xa66   : > { %p1962_p7 = pnand %p1961_p4, %p2120_p5 }
 0xa67   : > { %p1967_p11 = por %p1966_p10, %p1965_p9 }
 0xa68   : > { %p1963_p8 = pneg %p1962_p7 }
 0xa69   : > { %p1969_p13 = por %p1968_p12, %p1967_p11 }
 0xa6b   : > { %p1970_p0 = pnand %p1969_p13, %p1963_p8 }
 0xa6d   : > { %1973 = shalt.err (!%p1970_p0)
}
 0xa6e   : > { %1876 = dma.vmem_to_hbm [thread:$0]  (%p2120_p5), %s2405_s15, 128, %s2403_s24, %s1575_s30  }
 0xa6f PF: > { %p1882_p1 = scmp.ge.s32.totalorder %s2008_s20, 2  ;;  %s1600_s0 = sand.u32 1, %s1996_s17  }
 0xa70   : > { %s1601_s21 = scalar_lea.sflag [#allocation3], %s1600_s0 }
 0xa71   : > { %p1879_p2 = pnand %p1882_p1, %p2124_p6 }
 0xa73   : > { %1991 = dma.done.wait (!%p1879_p2), %s1601_s21, 128  }
 0xa74   : > { %1993 = vsyncadd (!%p1879_p2), %s1601_s21, 4294967168  ;;  %p21_p3 = scmp.ge.s32.totalorder %s2107_s23, 4   ;;  %s2462_s17 = smov %s2000_s18 }
 0xa75   : > { %s2463_s18 = smov %s2004_s19  ;;  %s2464_s19 = smov %s2118_s26 }
 0xa76   : > { %s2465_s20 = smov %s2107_s23  ;;  %23 = sbr.rel (!%p21_p3) target bundleno = 5 (0x5), region = 99 }
 0xa7d   :  { %1606 = vsyncpa [#allocation3], 1 }
 0xa7e   :  { %1608 = vsyncpa [#allocation3 + $0x1], 1 }

</bundles_post_ra>
